<compile_context>
chip_gen: v5e
topology: v5e:2x2
jax: 0.10.0
libtpu: 0.0.40
codegen_flags: <defaults>
</compile_context>

<pallas_src>
import functools

import jax
import jax.numpy as jnp
from jax.experimental import pallas as pl
from jax.experimental.pallas import tpu as pltpu

EPS = 1e-5


# ----------------------------------------------------------------------------
# Kernels
# ----------------------------------------------------------------------------
def _ln_withbias_kernel(x_ref, w_ref, b_ref, o_ref):
    # x_ref: (TILE_B, C, TILE_S) -- channels on sublanes, spatial on lanes.
    x = x_ref[...].astype(jnp.float32)
    inv_c = jnp.float32(1.0 / x.shape[1])
    mu = jnp.sum(x, axis=1, keepdims=True) * inv_c          # (TILE_B,1,TILE_S)
    ex2 = jnp.sum(x * x, axis=1, keepdims=True) * inv_c
    var = jnp.maximum(ex2 - mu * mu, 0.0)                    # unbiased=False
    y = (x - mu) * jax.lax.rsqrt(var + EPS)
    o_ref[...] = (y * w_ref[...] + b_ref[...]).astype(o_ref.dtype)


def _ln_biasfree_kernel(x_ref, w_ref, o_ref):
    x = x_ref[...].astype(jnp.float32)
    inv_c = jnp.float32(1.0 / x.shape[1])
    mu = jnp.sum(x, axis=1, keepdims=True) * inv_c
    ex2 = jnp.sum(x * x, axis=1, keepdims=True) * inv_c
    var = jnp.maximum(ex2 - mu * mu, 0.0)                    # centered variance
    y = x * jax.lax.rsqrt(var + EPS)                         # x NOT centered
    o_ref[...] = (y * w_ref[...]).astype(o_ref.dtype)


# ----------------------------------------------------------------------------
# Tiling plan
# ----------------------------------------------------------------------------
def _vmem_capacity_bytes():
    """Physical per-core VMEM; conservative (v7x, 64 MiB) fallback if unknown."""
    try:
        return int(pltpu.get_tpu_info().vmem_capacity_bytes)
    except Exception:  # pragma: no cover - non-TPU / older jax
        return 64 * 1024 * 1024


def _plan(b, c, s, itemsize, vmem_cap):
    """Pick (tile_b, tile_s, vmem_limit_bytes) for a (B, C, S) problem."""
    big_vmem = vmem_cap >= (96 << 20)                    # v5e / v6e (128 MiB)
    vmem_limit = (64 << 20) if big_vmem else (36 << 20)  # v7x: 64 MiB physical
    target_in_bytes = (4 << 20) if big_vmem else (2 << 20)

    # VMEM cost per input element: 2x double-buffered input + 2x output blocks
    # (input dtype) plus ~3 live f32 intermediates inside the kernel body.
    bytes_per_elem = 4 * itemsize + 3 * 4
    max_block_elems = (vmem_limit * 3 // 5) // bytes_per_elem   # <=60% of limit
    target_elems = max(min(target_in_bytes // itemsize, max_block_elems),
                       128 * c)

    # Spatial (lane) tile: 128-multiple (full extent if S < 128) so every
    # non-remainder block gets unmasked, lane-dense stores.
    if s <= 128:
        tile_s = s
    else:
        s_floor128 = (s // 128) * 128
        tile_s = min(s_floor128, max(128, (target_elems // c) // 128 * 128))

    # Batch tile: when one full-S slab is far below target, process several
    # images per grid step (normalization is per spatial column -> unchanged).
    tile_b = 1
    if tile_s >= s:
        tile_b = int(min(b, max(1, target_elems // (c * s))))

    # Keep >= ~4 grid steps when possible so both v7x TensorCores get work.
    while pl.cdiv(b, tile_b) * pl.cdiv(s, tile_s) < 4:
        if tile_b > 1:
            tile_b = (tile_b + 1) // 2
        elif tile_s > 128:
            tile_s = max(128, (tile_s // 2) // 128 * 128)
        else:
            break
    return tile_b, tile_s, vmem_limit


# ----------------------------------------------------------------------------
# Wrapper
# ----------------------------------------------------------------------------
@functools.partial(jax.jit, static_argnames=("ln_type", "tile_b", "tile_s"))
def layernorm_nchw(x, weight, bias, ln_type="WithBias", tile_b=None, tile_s=None):
    """Equivalent to the PyTorch LayerNorm(dim, LayerNorm_type) forward.

    x: (B, C, H, W); weight, bias: (C,).
    """
    assert x.ndim == 4, "expected NCHW input"
    b, c, h, w = x.shape
    s = h * w
    x3 = x.reshape(b, c, s)  # free reshape: NCHW is already (B, C, S)

    itemsize = jnp.dtype(x.dtype).itemsize
    auto_tb, auto_ts, vmem_limit = _plan(b, c, s, itemsize, _vmem_capacity_bytes())
    tb = auto_tb if tile_b is None else int(tile_b)
    ts = auto_ts if tile_s is None else int(tile_s)

    grid = (pl.cdiv(b, tb), pl.cdiv(s, ts))  # partial edge blocks are masked
    x_spec = pl.BlockSpec((tb, c, ts), lambda bi, si: (bi, 0, si))
    p_spec = pl.BlockSpec((1, c, 1), lambda bi, si: (0, 0, 0))
    out_shape = jax.ShapeDtypeStruct((b, c, s), x.dtype)
    cparams = pltpu.CompilerParams(
        dimension_semantics=("parallel", "parallel"),
        vmem_limit_bytes=vmem_limit,
    )

    w3 = weight.reshape(1, c, 1).astype(jnp.float32)
    if ln_type == "BiasFree":
        out = pl.pallas_call(
            _ln_biasfree_kernel,
            grid=grid,
            in_specs=[x_spec, p_spec],
            out_specs=x_spec,
            out_shape=out_shape,
            compiler_params=cparams,
        )(x3, w3)
    else:
        b3 = bias.reshape(1, c, 1).astype(jnp.float32)
        out = pl.pallas_call(
            _ln_withbias_kernel,
            grid=grid,
            in_specs=[x_spec, p_spec, p_spec],
            out_specs=x_spec,
            out_shape=out_shape,
            compiler_params=cparams,
        )(x3, w3, b3)

    return out.reshape(b, c, h, w)


# ----------------------------------------------------------------------------
# Reference + self-test
# ----------------------------------------------------------------------------
def _reference(x, weight, bias, ln_type):
    xf = x.astype(jnp.float32)
    mu = jnp.mean(xf, axis=1, keepdims=True)
    var = jnp.mean((xf - mu) ** 2, axis=1, keepdims=True)
    wb = weight.reshape(1, -1, 1, 1).astype(jnp.float32)
    if ln_type == "BiasFree":
        y = xf * jax.lax.rsqrt(var + EPS) * wb
    else:
        y = (xf - mu) * jax.lax.rsqrt(var + EPS) * wb \
            + bias.reshape(1, -1, 1, 1).astype(jnp.float32)
    return y.astype(x.dtype)


if __name__ == "__main__":
    key = jax.random.PRNGKey(0)
    ok = True
    # (shape, tile_b override, tile_s override, dtype, tolerance)
    cases = [
        ((2, 4, 16, 16), None, None, jnp.float32, 5e-5),   # auto plan, multi-block grid
        ((1, 4, 16, 15), None, None, jnp.float32, 5e-5),   # ragged S -> remainder block
        ((3, 8, 8, 8),   2,    None, jnp.float32, 5e-5),   # batch-tiled, partial batch block
        ((2, 4, 16, 16), None, 128,  jnp.bfloat16, 2e-2),  # bf16 in/out
    ]
    for shape, tb, ts, dtype, tol in cases:
        B, C, H, W = shape
        kx, kw, kb, key = jax.random.split(key, 4)
        x = jax.random.normal(kx, shape, dtype=jnp.float32).astype(dtype)
        weight = 0.5 + jax.random.uniform(kw, (C,), dtype=jnp.float32)
        bias = jax.random.normal(kb, (C,), dtype=jnp.float32)
        for ln_type in ("WithBias", "BiasFree"):
            out = layernorm_nchw(x, weight, bias, ln_type=ln_type,
                                 tile_b=tb, tile_s=ts)
            out = jax.block_until_ready(out)
            ref = _reference(x, weight, bias, ln_type)
            a = out.astype(jnp.float32)
            r = ref.astype(jnp.float32)
            if not jnp.allclose(a, r, atol=tol, rtol=tol):
                ok = False
                err = float(jnp.max(jnp.abs(a - r)))
                print(f"MISMATCH shape={shape} dtype={jnp.dtype(dtype).name} "
                      f"tiles=({tb},{ts}) {ln_type}: max_abs_err={err}")

    if ok:
        print("KERNEL_OK")
    else:
        raise SystemExit(1)
</pallas_src>

<mosaic_0001>
module attributes {stable_mosaic.version = 11 : i64} {
  func.func @_ln_withbias_kernel(%arg0: i32, %arg1: i32, %arg2: memref<1x4x128xf32, #tpu.memory_space<vmem>>, %arg3: memref<1x4x1xf32, #tpu.memory_space<vmem>>, %arg4: memref<1x4x1xf32, #tpu.memory_space<vmem>>, %arg5: memref<1x4x128xf32, #tpu.memory_space<vmem>>) attributes {dimension_semantics = [#tpu.dimension_semantics<parallel>, #tpu.dimension_semantics<parallel>], iteration_bounds = array<i64: 2, 2>, scalar_prefetch = 0 : i64, scratch_operands = 0 : i64, tpu.core_type = #tpu.core_type<tc>, window_params = [{transform_indices = @transform_0, window_bounds = array<i64: 1, 4, 128>}, {pipeline_mode = #tpu.pipeline_mode<synchronous>, transform_indices = @transform_1, window_bounds = array<i64: 1, 4, 1>}, {pipeline_mode = #tpu.pipeline_mode<synchronous>, transform_indices = @transform_2, window_bounds = array<i64: 1, 4, 1>}, {transform_indices = @transform_3, window_bounds = array<i64: 1, 4, 128>}]} {
    %c0 = arith.constant 0 : index
    %c0_0 = arith.constant 0 : index
    %c0_1 = arith.constant 0 : index
    %0 = vector.load %arg2[%c0, %c0_0, %c0_1] : memref<1x4x128xf32, #tpu.memory_space<vmem>>, vector<1x4x128xf32>
    %cst = arith.constant dense<0.000000e+00> : vector<1x128xf32>
    %1 = vector.multi_reduction <add>, %0, %cst [1] : vector<1x4x128xf32> to vector<1x128xf32>
    %2 = vector.shape_cast %1 : vector<1x128xf32> to vector<1x1x128xf32>
    %cst_2 = arith.constant 2.500000e-01 : f32
    %3 = vector.broadcast %cst_2 : f32 to vector<1x1x128xf32>
    %4 = arith.mulf %2, %3 : vector<1x1x128xf32>
    %5 = arith.mulf %0, %0 : vector<1x4x128xf32>
    %cst_3 = arith.constant dense<0.000000e+00> : vector<1x128xf32>
    %6 = vector.multi_reduction <add>, %5, %cst_3 [1] : vector<1x4x128xf32> to vector<1x128xf32>
    %7 = vector.shape_cast %6 : vector<1x128xf32> to vector<1x1x128xf32>
    %cst_4 = arith.constant 2.500000e-01 : f32
    %8 = vector.broadcast %cst_4 : f32 to vector<1x1x128xf32>
    %9 = arith.mulf %7, %8 : vector<1x1x128xf32>
    %10 = arith.mulf %4, %4 : vector<1x1x128xf32>
    %11 = arith.subf %9, %10 : vector<1x1x128xf32>
    %cst_5 = arith.constant 0.000000e+00 : f32
    %12 = vector.broadcast %cst_5 : f32 to vector<1x1x128xf32>
    %13 = arith.maximumf %11, %12 : vector<1x1x128xf32>
    %14 = vector.broadcast %4 : vector<1x1x128xf32> to vector<1x4x128xf32>
    %15 = arith.subf %0, %14 : vector<1x4x128xf32>
    %cst_6 = arith.constant 9.99999974E-6 : f32
    %16 = vector.broadcast %cst_6 : f32 to vector<1x1x128xf32>
    %17 = arith.addf %13, %16 : vector<1x1x128xf32>
    %18 = math.rsqrt %17 : vector<1x1x128xf32>
    %19 = vector.broadcast %18 : vector<1x1x128xf32> to vector<1x4x128xf32>
    %20 = arith.mulf %15, %19 : vector<1x4x128xf32>
    %c0_7 = arith.constant 0 : index
    %c0_8 = arith.constant 0 : index
    %c0_9 = arith.constant 0 : index
    %21 = vector.load %arg3[%c0_7, %c0_8, %c0_9] : memref<1x4x1xf32, #tpu.memory_space<vmem>>, vector<1x4x1xf32>
    %22 = vector.broadcast %21 : vector<1x4x1xf32> to vector<1x4x128xf32>
    %23 = arith.mulf %20, %22 : vector<1x4x128xf32>
    %c0_10 = arith.constant 0 : index
    %c0_11 = arith.constant 0 : index
    %c0_12 = arith.constant 0 : index
    %24 = vector.load %arg4[%c0_10, %c0_11, %c0_12] : memref<1x4x1xf32, #tpu.memory_space<vmem>>, vector<1x4x1xf32>
    %25 = vector.broadcast %24 : vector<1x4x1xf32> to vector<1x4x128xf32>
    %26 = arith.addf %23, %25 : vector<1x4x128xf32>
    %c0_13 = arith.constant 0 : index
    %c0_14 = arith.constant 0 : index
    %c0_15 = arith.constant 0 : index
    %27 = vector.load %arg5[%c0_13, %c0_14, %c0_15] : memref<1x4x128xf32, #tpu.memory_space<vmem>>, vector<1x4x128xf32>
    tpu.vector_store %arg5[%c0_13, %c0_14, %c0_15], %26 {strides = array<i32>} : memref<1x4x128xf32, #tpu.memory_space<vmem>>, vector<1x4x128xf32>,
    return
  }
  func.func @transform_0(%arg0: i32, %arg1: i32) -> (i32, i32, i32) {
    %c0_i32 = arith.constant 0 : i32
    %c0_i32_0 = arith.constant 0 : i32
    return %arg0, %c0_i32, %arg1 : i32, i32, i32
  }
  func.func @transform_1(%arg0: i32, %arg1: i32) -> (i32, i32, i32) {
    %c0_i32 = arith.constant 0 : i32
    %c0_i32_0 = arith.constant 0 : i32
    %c0_i32_1 = arith.constant 0 : i32
    %c0_i32_2 = arith.constant 0 : i32
    return %c0_i32, %c0_i32_0, %c0_i32_1 : i32, i32, i32
  }
  func.func @transform_2(%arg0: i32, %arg1: i32) -> (i32, i32, i32) {
    %c0_i32 = arith.constant 0 : i32
    %c0_i32_0 = arith.constant 0 : i32
    %c0_i32_1 = arith.constant 0 : i32
    %c0_i32_2 = arith.constant 0 : i32
    return %c0_i32, %c0_i32_0, %c0_i32_1 : i32, i32, i32
  }
  func.func @transform_3(%arg0: i32, %arg1: i32) -> (i32, i32, i32) {
    %c0_i32 = arith.constant 0 : i32
    %c0_i32_0 = arith.constant 0 : i32
    return %arg0, %c0_i32, %arg1 : i32, i32, i32
  }
}

</mosaic_0001>

<bundles_post_ra>
// kernel: layernorm_nchw.1
= control target key start
LH: loop header
LB: loop body
LE: loop exit
PB: predicated region body
PF: predicated region fallthrough
CT: control target
= control target key end

     0   :  { %s454_s12 = smov 0   ;;  %s456_s13 = smov 0   ;;  %s518_s0 = inlined_call_operand.vmem [shape: f32[2,4,256], index: 0, kind: input, shape index: {}]   ;;  %s519_s1 = inlined_call_operand.vmem [shape: f32[1,4,1], index: 1, kind: input, shape index: {}]   ;;  %s520_s2 = inlined_call_operand.vmem [shape: f32[1,4,1], index: 2, kind: input, shape index: {}]   ;;  %s521_s3 = inlined_call_operand.vmem [shape: f32[2,4,256], index: 3, kind: output, shape index: {}]  }
   0x1   :  { %s458_s14 = smov 0   ;;  %s460_s15 = smov 0  }
   0x2   :  { %s462_s16 = smov 0  }
   0x3 LB: > { %s22_s17 = sadd.s32 1, %s423_s14  ;;  %s25_s18 = sadd.s32 1, %s427_s15  ;;  %s431_s16 = sphi %s462_s16, %s13_s16   ;;  %s427_s15 = sphi %s460_s15, %s525_s15   ;;  %s423_s14 = sphi %s458_s14, %s524_s14   ;;  %s419_s13 = sphi %s456_s13, %s523_s13   ;;  %s415_s12 = sphi %s454_s12, %s522_s12  }
   0x4   : > { %p23_p0 = scmp.ge.s32.totalorder %s22_s17, 2  ;;  %p342_p1 = scmp.ge.s32.totalorder %s431_s16, 1 }
   0x5   : > { %p156_p2 = scmp.lt.s32.totalorder %s431_s16, 5 }
   0x6   : > { %s527_s17 = smov (%p23_p0, %s22_s17), 0  ;;  %s529_s18 = smov (!%p23_p0, %s25_s18), %s427_s15 }
   0x7   : > { %p157_p3 = pnand %p342_p1, %p156_p2  ;;  %p27_p4 = scmp.ge.s32.totalorder %s529_s18, 2 }
   0x8   : > { %p186_p5 = scmp.lt.s32.totalorder (!%p157_p3), %s419_s13, 1  ;;  %p188_p6 = scmp.lt.s32.totalorder (!%p157_p3), %s415_s12, 1 }
   0x9   : > { %s531_s18 = smov (%p27_p4, %s529_s18), 0  ;;  %160 = sbr.rel (%p157_p3) target bundleno = 142 (0x8e), region = 32 }
   0xe   : > { %v237_v0 = vld [vmem:[%s519_s1] sm:$0xf]  ;;  %v433_v1 = vmov 0   ;;  %s533_s13 = smov (!%p186_p5, %s419_s13), 1  ;;  %s535_s12 = smov (!%p188_p6, %s415_s12), 1  ;;  %vm203_vm0 = vcmask 1043456  }
   0xf   : > { %390 = vset.pattern.permute.xlu0 %v433_v1  ;;  %v244_v2 = vld [vmem:[%s520_s2] sm:$0xf]  ;;  %s343_s23 = sshll.u32 %s533_s13, 1 }
  0x10   : > { %240 = vperm.xlu0 %390, %v237_v0   ;;  %s490_s24 = sadd.s32 %s343_s23, %s535_s12 }
  0x11   : > { %s344_s25 = sshll.u32 %s490_s24, 2 }
  0x12   : > { %s193_s28 = scalar_lea.vmem %s518_s0, %s344_s25  ;;  %s201_s4 = scalar_lea.vmem %s521_s3, %s344_s25 }
  0x13   : > { %v202_v3 = vld [vmem:[%s193_s28] sm:$0xf] }
  0x14   : > { %v204_v4 = vsel %vm203_vm0, %v202_v3, 0.0  ;;  %v212_v5 = vmul.f32 %v202_v3, %v202_v3 }
  0x15   : > { %v205_v6 = vrot.slane %v204_v4, 4 }
  0x16   : > { %v213_v7 = vsel %vm203_vm0, %v212_v5, 0.0 }
  0x17   : > { %v206_v8 = vadd.f32 %v205_v6, %v204_v4  ;;  %v214_v9 = vrot.slane %v213_v7, 4 }
  0x18   : > { %247 = vperm.xlu0 %390, %v244_v2  }
  0x19   : > { %v207_v10 = vrot.slane %v206_v8, 2  ;;  %v215_v11 = vadd.f32 %v214_v9, %v213_v7 }
  0x1b   : > { %v208_v12 = vadd.f32 %v207_v10, %v206_v8  ;;  %v216_v13 = vrot.slane %v215_v11, 2 }
  0x1d   : > { %v209_v14 = vrot.slane %v208_v12, 1  ;;  %v217_v15 = vadd.f32 %v216_v13, %v215_v11 }
  0x1f   : > { %v210_v16 = vadd.f32 %v209_v14, %v208_v12  ;;  %v218_v17 = vrot.slane %v217_v15, 1 }
  0x21   : > { %v211_v18 = vmul.f32 0.25, %v210_v16  ;;  %v219_v19 = vadd.f32 %v218_v17, %v217_v15 }
  0x23   : > { %v220_v20 = vmul.f32 0.25, %v219_v19  ;;  %v221_v21 = vmul.f32 %v211_v18, %v211_v18  ;;  %v224_v31 = vsub.f32 %v202_v3, %v211_v18 }
  0x25   : > { %v222_v22 = vsub.f32 %v220_v20, %v221_v21 }
  0x27   : > { %v223_v23 = vmax.f32 %v222_v22, 0.0 }
  0x29   : > { %v225_v24 = vadd.f32 1e-05, %v223_v23 }
  0x2b   : > { %391 = vrsqrt.f32 %v225_v24  ;;  %vm232_vm1 = vweird.f32 %v225_v24 }
  0x31   : > { %v392_v25 = vpop.eup %391 }
  0x32   : > { %v227_v26 = vmul.f32 %v392_v25, %v225_v24  ;;  %vm233_vm2 = vweird.f32 %v392_v25 }
  0x33   : > { %vm234_vm3 = vmor %vm232_vm1, %vm233_vm2 }
  0x34   : > { %v228_v27 = vmul.f32 %v392_v25, %v227_v26 }
  0x36   : > { %v229_v28 = vmul.f32 0.5, %v228_v27 }
  0x38   : > { %v230_v29 = vsub.f32 1.5, %v229_v28 }
  0x3a   : > { %v231_v30 = vmul.f32 %v392_v25, %v230_v29 }
  0x3c   : > { %v235_v33 = vsel %vm234_vm3, %v392_v25, %v231_v30 }
  0x3d   : > { %v236_v34 = vmul.f32 %v235_v33, %v224_v31 }
  0x82   : > { %v241_v32 = vpop.permute.xlu0 %240 }
  0x83   : > { %v243_v35 = vmul.f32 %v241_v32, %v236_v34 }
  0x8a   : > { %v248_v36 = vpop.permute.xlu0 %247 }
  0x8b   : > { %v250_v37 = vadd.f32 %v248_v36, %v243_v35 }
  0x8d   : > { %251 = vst [vmem:[%s201_s4] sm:$0xf] %v250_v37 }
  0x8e PF: > { %s13_s16 = sadd.s32 1, %s431_s16   ;;  %s522_s12 = smov %s423_s14 }
  0x8f   : > { %p10_p7 = scmp.ge.s32.totalorder %s13_s16, 6   ;;  %s523_s13 = smov %s427_s15 }
  0x90   : > { %s524_s14 = smov %s527_s17  ;;  %s525_s15 = smov %s531_s18 }
  0x91   :  { %12 = sbr.rel (!%p10_p7) target bundleno = 3 (0x3), region = 62 }

</bundles_post_ra>
